<compile_context>
chip_gen: v7x
topology: tpu7x:2x2x1
jax: 0.10.0
libtpu: 0.0.40
codegen_flags: <defaults>
</compile_context>

<pallas_src>
import functools
import math

import jax
import jax.numpy as jnp
from jax.experimental import pallas as pl
from jax.experimental.pallas import tpu as pltpu


# ---------------------------------------------------------------------------
# Parameter ("buffer") setup — identical math to the torch init.
# ---------------------------------------------------------------------------
def make_positional_encoding_table(d_model, max_len=5000, dtype=jnp.float32):
    position = jnp.arange(max_len, dtype=jnp.float32)[:, None]            # (max_len, 1)
    div_term = jnp.exp(
        jnp.arange(0, d_model, 2, dtype=jnp.float32) * (-math.log(10000.0) / d_model)
    )                                                                     # (ceil(d/2),)
    angles = position * div_term                                          # (max_len, ceil(d/2))
    pe = jnp.zeros((max_len, d_model), dtype=jnp.float32)
    pe = pe.at[:, 0::2].set(jnp.sin(angles))
    pe = pe.at[:, 1::2].set(jnp.cos(angles)[:, : d_model // 2])           # safe for odd d_model
    return pe.astype(dtype)


# ---------------------------------------------------------------------------
# Kernels (operate on lane-dense (rows, B*D) tiles)
# ---------------------------------------------------------------------------
def _pe_add_kernel(x_ref, pe_ref, o_ref, *, batch):
    # pe tile (rows, D) broadcast across batch along the lane axis -> (rows, B*D)
    pe_row = jnp.tile(pe_ref[...].astype(jnp.float32), (1, batch))
    o_ref[...] = (x_ref[...].astype(jnp.float32) + pe_row).astype(o_ref.dtype)


def _pe_add_dropout_kernel(x_ref, pe_ref, r_ref, o_ref, *, batch, threshold, inv_keep):
    # Inverted dropout: keep with prob keep_prob, scale survivors by 1/keep_prob.
    pe_row = jnp.tile(pe_ref[...].astype(jnp.float32), (1, batch))
    y = x_ref[...].astype(jnp.float32) + pe_row
    keep = r_ref[...] < threshold          # int32 threshold compare, no float convert
    o_ref[...] = jnp.where(keep, y * inv_keep, 0.0).astype(o_ref.dtype)


# ---------------------------------------------------------------------------
# Wrapper
# ---------------------------------------------------------------------------
def _choose_tile_rows(seq_len, lanes, itemsize, target_buf_bytes=4 * 1024 * 1024):
    """Rows per tile: multiple of 8 (sublane), <= ~4 MiB per buffer, <= 512 rows."""
    row_bytes = max(lanes * itemsize, 1)
    rows = target_buf_bytes // row_bytes
    rows = min(rows, 512)
    rows = max((rows // 8) * 8, 8)
    s_padded = -(-seq_len // 8) * 8
    return min(rows, s_padded)


def positional_encoding(x, pe, *, p=0.1, training=False, seed=0, tile_rows=None):
    """x: (S, B, D) float array. pe: (max_len, D) table. Returns (S, B, D)."""
    S, B, D = x.shape
    max_len, d_model = pe.shape
    assert d_model == D and S <= max_len

    lanes = B * D
    x2 = x.reshape(S, lanes)  # row-major: free lane-dense view

    if tile_rows is None:
        tile_rows = _choose_tile_rows(S, lanes, jnp.dtype(x.dtype).itemsize)
    grid = (pl.cdiv(S, tile_rows),)

    x_spec = pl.BlockSpec((tile_rows, lanes), lambda i: (i, 0))
    pe_spec = pl.BlockSpec((tile_rows, D), lambda i: (i, 0))   # window into full pe table
    out_spec = pl.BlockSpec((tile_rows, lanes), lambda i: (i, 0))

    compiler_params = pltpu.CompilerParams(
        dimension_semantics=("parallel",),
        vmem_limit_bytes=48 * 1024 * 1024,
    )

    if (not training) or p == 0.0:
        out2 = pl.pallas_call(
            functools.partial(_pe_add_kernel, batch=B),
            out_shape=jax.ShapeDtypeStruct((S, lanes), x.dtype),
            grid=grid,
            in_specs=[x_spec, pe_spec],
            out_specs=out_spec,
            compiler_params=compiler_params,
        )(x2, pe)
        return out2.reshape(S, B, D)

    keep_prob = 1.0 - float(p)
    threshold = int(round(keep_prob * (1 << 24)))             # 24-bit integer threshold
    key = jax.random.PRNGKey(seed)
    rbits = jax.random.randint(key, (S, lanes), 0, 1 << 24, dtype=jnp.int32)

    out2 = pl.pallas_call(
        functools.partial(
            _pe_add_dropout_kernel,
            batch=B,
            threshold=threshold,
            inv_keep=1.0 / keep_prob,
        ),
        out_shape=jax.ShapeDtypeStruct((S, lanes), x.dtype),
        grid=grid,
        in_specs=[x_spec, pe_spec, x_spec],   # rbits tiled exactly like x
        out_specs=out_spec,
        compiler_params=compiler_params,
    )(x2, pe, rbits)
    return out2.reshape(S, B, D)


# ---------------------------------------------------------------------------
# Main
# ---------------------------------------------------------------------------
if __name__ == "__main__":
    S, B, D = 16, 4, 32          # seq_len, batch, d_model (B*D = 128 lanes)
    max_len = 5000
    dropout_p = 0.1

    key = jax.random.PRNGKey(0)
    x = jax.random.normal(key, (S, B, D), dtype=jnp.float32)
    pe = make_positional_encoding_table(D, max_len=max_len)

    # Eval-mode forward (dropout == identity): must match reference exactly.
    out_eval = positional_encoding(x, pe, p=dropout_p, training=False, tile_rows=8)
    out_eval = jax.block_until_ready(out_eval)
    ref = x + pe[:S][:, None, :]
    assert out_eval.shape == (S, B, D)
    assert jnp.allclose(out_eval, ref, atol=1e-6, rtol=1e-6), "eval-mode mismatch"

    # Training-mode forward: every element is either dropped (0) or the
    # reference value scaled by 1/(1-p).
    out_train = positional_encoding(
        x, pe, p=dropout_p, training=True, seed=1234, tile_rows=8
    )
    out_train = jax.block_until_ready(out_train)
    assert out_train.shape == (S, B, D)
    assert bool(jnp.all(jnp.isfinite(out_train)))
    scaled_ref = ref / (1.0 - dropout_p)
    dropped = jnp.isclose(out_train, 0.0)
    kept = jnp.isclose(out_train, scaled_ref, atol=1e-5, rtol=1e-5)
    assert bool(jnp.all(dropped | kept)), "training-mode values inconsistent"

    print("KERNEL_OK")
</pallas_src>

<mosaic_0001>
module attributes {stable_mosaic.version = 11 : i64} {
  func.func @_pe_add_kernel(%arg0: i32, %arg1: memref<8x128xf32, #tpu.memory_space<vmem>>, %arg2: memref<8x32xf32, #tpu.memory_space<vmem>>, %arg3: memref<8x128xf32, #tpu.memory_space<vmem>>) attributes {dimension_semantics = [#tpu.dimension_semantics<parallel>], iteration_bounds = array<i64: 2>, scalar_prefetch = 0 : i64, scratch_operands = 0 : i64, tpu.core_type = #tpu.core_type<tc>, window_params = [{transform_indices = @transform_0, window_bounds = array<i64: 8, 128>}, {transform_indices = @transform_1, window_bounds = array<i64: 8, 32>}, {transform_indices = @transform_2, window_bounds = array<i64: 8, 128>}]} {
    %c0 = arith.constant 0 : index
    %c0_0 = arith.constant 0 : index
    %0 = vector.load %arg2[%c0, %c0_0] : memref<8x32xf32, #tpu.memory_space<vmem>>, vector<8x32xf32>
    %1 = tpu.concatenate %0, %0, %0, %0 in 1 : vector<8x32xf32>, vector<8x32xf32>, vector<8x32xf32>, vector<8x32xf32> -> vector<8x128xf32>
    %c0_1 = arith.constant 0 : index
    %c0_2 = arith.constant 0 : index
    %2 = vector.load %arg1[%c0_1, %c0_2] : memref<8x128xf32, #tpu.memory_space<vmem>>, vector<8x128xf32>
    %3 = arith.addf %2, %1 : vector<8x128xf32>
    %c0_3 = arith.constant 0 : index
    %c0_4 = arith.constant 0 : index
    %4 = vector.load %arg3[%c0_3, %c0_4] : memref<8x128xf32, #tpu.memory_space<vmem>>, vector<8x128xf32>
    tpu.vector_store %arg3[%c0_3, %c0_4], %3 {strides = array<i32>} : memref<8x128xf32, #tpu.memory_space<vmem>>, vector<8x128xf32>,
    return
  }
  func.func @transform_0(%arg0: i32) -> (i32, i32) {
    %c0_i32 = arith.constant 0 : i32
    %c0_i32_0 = arith.constant 0 : i32
    return %arg0, %c0_i32 : i32, i32
  }
  func.func @transform_1(%arg0: i32) -> (i32, i32) {
    %c0_i32 = arith.constant 0 : i32
    %c0_i32_0 = arith.constant 0 : i32
    return %arg0, %c0_i32 : i32, i32
  }
  func.func @transform_2(%arg0: i32) -> (i32, i32) {
    %c0_i32 = arith.constant 0 : i32
    %c0_i32_0 = arith.constant 0 : i32
    return %arg0, %c0_i32 : i32, i32
  }
}

</mosaic_0001>

<bundles_post_ra>
// kernel: tpu_custom_call.1
= control target key start
LH: loop header
LB: loop body
LE: loop exit
PB: predicated region body
PF: predicated region fallthrough
CT: control target
= control target key end

     0   :  { %7 = vsyncpa [#allocation3], 0  ;;  %s502_s0 = inlined_call_operand.vmem [shape: f32[16,128], index: 0, kind: input, shape index: {}]   ;;  %s503_s1 = inlined_call_operand.vmem [shape: f32[5000,32], index: 1, kind: input, shape index: {}]   ;;  %s504_s2 = inlined_call_operand.hbm [shape: f32[16,128], index: 2, kind: output, shape index: {}]  }
   0x1   :  { %9 = vsyncpa [#allocation3 + $0x1], 0  ;;  %s397_s9 = smov 0   ;;  %s399_s10 = smov 0  }
   0x2   :  { %s401_s11 = smov 0   ;;  %s403_s12 = smov 0  }
   0x3 LB: > { %s418_s13 = sadd.s32 4294967295, %s376_s12   ;;  %s261_s14 = sadd.s32 4294967294, %s376_s12   ;;  %s376_s12 = sphi %s403_s12, %s510_s12   ;;  %s372_s11 = sphi %s401_s11, %s509_s11   ;;  %s368_s10 = sphi %s399_s10, %s508_s10   ;;  %s364_s9 = sphi %s397_s9, %s507_s9  }
   0x4   : > { %s422_s15 = sadd.s32 1, %s376_s12   ;;  %s74_s16 = sadd.s32 1, %s372_s11 }
   0x5   : > { %s71_s17 = ssub.s32 %s376_s12, %s422_s15  ;;  %p84_p0 = scmp.ne.s32.totalorder %s372_s11, %s368_s10 }
   0x6   : > { %p72_p1 = scmp.eq.s32.totalorder %s71_s17, 0  ;;  %p85_p2 = scmp.eq.s32.totalorder %s418_s13, 1 }
   0x7   : > { %p90_p3 = scmp.ne.s32.totalorder %s368_s10, %s364_s9  ;;  %p91_p4 = scmp.eq.s32.totalorder %s261_s14, 1 }
   0x8   : > { %s433_s18 = scalar_select %p72_p1, %s372_s11, %s74_s16  }
   0x9   : > { %p435_p5 = por %p85_p2, %p84_p0  ;;  %p439_p6 = por %p91_p4, %p90_p3 }
   0xa   : > { %p264_p7 = scmp.ge.s32.totalorder %s376_s12, 1  ;;  %p123_p8 = scmp.lt.s32.totalorder %s376_s12, 3 }
   0xc   : > { %p124_p9 = pnand %p264_p7, %p123_p8 }
   0xd   : > { %p152_p10 = scmp.lt.s32.totalorder (!%p124_p9), %s418_s13, 624  ;;  %s378_s26 = smov (!%p124_p9), 32   ;;  %vm167_vm0 = vcmask (!%p124_p9), 261120   ;;  %vm169_vm1 = vcmask (!%p124_p9), 523264   ;;  %vm171_vm2 = vcmask (!%p124_p9), 785408  }
   0xe   : > { %127 = sbr.rel (%p124_p9) target bundleno = 163 (0xa3), region = 28  ;;  %s379_s27 = smov (!%p124_p9), 96  }
   0xf   : > { %s380_s28 = smov (!%p124_p9), 64   ;;  %p148_p11 = scmp.lt.s32.totalorder (!%p124_p9), %s418_s13, 1 }
  0x10   : > { %s145_s30 = sand.u32 (!%p124_p9), 1, %s368_s10   ;;  %s269_s8 = sshll.u32 (!%p124_p9), %s418_s13, 7 }
  0x11   : > { %s265_s4 = sshll.u32 (!%p124_p9), %s145_s30, 3  ;;  %s177_s23 = scalar_lea.sflag (!%p124_p9), [#allocation3], %s145_s30 }
  0x12   : > { %s147_s14 = scalar_lea.vmem (!%p124_p9), [#allocation2], %s265_s4 }
  0x13   : > { %s190_s16 = sshll.u32 (!%p124_p9), %s147_s14, 4  ;;  %s462_s16 = int_to_ptr.vmem [resolvable:$true] %s190_s16 }
  0x14   : > { %s314_s24 = scalar_lea.vmem (!%p124_p9), %s462_s16, 128 }
  0x15   : > { %s153_s21 = scalar_select %p152_p10, %s418_s13, 624 }
  0x16   : > { %s149_s29 = scalar_select %p148_p11, %s418_s13, 1 }
  0x17   : > { %s267_s22 = sshll.u32 %s153_s21, 3  ;;  %p315_p12 = scmp.ne.s32.totalorder %s462_s16, %s314_s24 }
  0x18   : > { %s155_s25 = scalar_lea.vmem %s503_s1, %s267_s22  ;;  %s266_s3 = sshll.u32 %s149_s29, 3 }
  0x19   : > { %v156_v0 = vld [vmem:[%s155_s25] sm:$0xff]  ;;  %s151_s7 = scalar_lea.vmem %s502_s0, %s266_s3  ;;  %s460_s22 = scalar_lea.hbm %s504_s2, %s269_s8 }
  0x1a   : > { %158 = vrot.lane.b32.xlu0 %v156_v0, %s378_s26  ;;  %164 = vrot.lane.b32.xlu1 %v156_v0, %s379_s27  ;;  %v173_v5 = vld [vmem:[%s151_s7] sm:$0xff]  ;;  %p316_p13 = pnand %p315_p12, %p435_p5  ;;  %s381_s13 = smov [#allocation2]  }
  0x1b   : > { %s318_s25 = sshll.u32 %s381_s13, 4  ;;  %s319_s25 = int_to_ptr.vmem [resolvable:$false] %s318_s25 }
  0x1c   : > { %p317_p0 = pneg %p316_p13  ;;  %s320_s26 = scalar_lea.vmem %s319_s25, 256 }
  0x1d   : > { %p321_p1 = scmp.lt.s32.totalorder %s462_s16, %s319_s25  ;;  %p322_p2 = scmp.lt.s32.totalorder %s320_s26, %s314_s24 }
  0x1e   : > { %161 = vrot.lane.b32.xlu0 %v156_v0, %s380_s28 }
  0x1f   : > { %p323_p3 = por %p322_p2, %p321_p1 }
  0x21   : > { %p324_p4 = pnand %p323_p3, %p317_p0 }
  0x8c   : > { %v159_v1 = vpop.permute.xlu0 %158  ;;  %v165_v2 = vpop.permute.xlu1 %164 }
  0x8d   : > { %v168_v3 = vsel %vm167_vm0, %v156_v0, %v159_v1 }
  0x90   : > { %v162_v4 = vpop.permute.xlu0 %161 }
  0x91   : > { %v170_v6 = vsel %vm169_vm1, %v168_v3, %v162_v4 }
  0x92   : > { %v172_v7 = vsel %vm171_vm2, %v170_v6, %v165_v2 }
  0x93   : > { %v174_v8 = vadd.f32 %v173_v5, %v172_v7 }
  0x95   : > { %175 = vst [vmem:[%s147_s14] sm:$0xff] %v174_v8 }
  0x96   : > { %327 = shalt.err (!%p324_p4)
}
  0x97   : > { %s328_s27 = scalar_lea.hbm %s460_s22, 128  ;;  %s332_s30 = scalar_lea.hbm %s504_s2, 256 }
  0x98   : > { %p329_p7 = scmp.ne.s32.totalorder %s460_s22, %s328_s27  ;;  %p333_p10 = scmp.lt.u32.totalorder %s460_s22, %s504_s2 }
  0x99   : > { %p334_p11 = scmp.lt.u32.totalorder %s332_s30, %s328_s27  ;;  %p336_p13 = scmp.lt.u32.totalorder %s328_s27, %s460_s22 }
  0x9a   : > { %p330_p8 = pnand %p329_p7, %p435_p5 }
  0x9b   : > { %p335_p12 = por %p334_p11, %p333_p10 }
  0x9c   : > { %p331_p9 = pneg %p330_p8 }
  0x9d   : > { %p337_p0 = por %p336_p13, %p335_p12 }
  0x9f   : > { %p338_p1 = pnand %p337_p0, %p331_p9 }
  0xa1   : > { %341 = shalt.err (!%p338_p1)
}
  0xa2   : > { %272 = dma.vmem_to_hbm [thread:$0]  (%p435_p5), %s462_s16, 128, %s460_s22, %s177_s23  }
  0xa3 PF: > { %p278_p2 = scmp.ge.s32.totalorder %s376_s12, 2  ;;  %s202_s5 = sand.u32 1, %s364_s9  }
  0xa4   : > { %s203_s6 = scalar_lea.sflag [#allocation3], %s202_s5 }
  0xa5   : > { %p275_p3 = pnand %p278_p2, %p439_p6 }
  0xa7   : > { %359 = dma.done.wait (!%p275_p3), %s203_s6, 128  }
  0xa8   : > { %361 = vsyncadd (!%p275_p3), %s203_s6, 4294967168  ;;  %p12_p4 = scmp.ge.s32.totalorder %s422_s15, 4   ;;  %s507_s9 = smov %s368_s10 }
  0xa9   : > { %s508_s10 = smov %s372_s11  ;;  %s509_s11 = smov %s433_s18 }
  0xaa   : > { %s510_s12 = smov %s422_s15  ;;  %14 = sbr.rel (!%p12_p4) target bundleno = 3 (0x3), region = 66 }
  0xb1   :  { %208 = vsyncpa [#allocation3], 1 }
  0xb2   :  { %210 = vsyncpa [#allocation3 + $0x1], 1 }

</bundles_post_ra>
